<compile_context>
chip_gen: v7x
topology: tpu7x:2x2x1
jax: 0.10.0
libtpu: 0.0.40
codegen_flags: <defaults>
</compile_context>

<pallas_src>
import functools

import jax
import jax.numpy as jnp
from jax.experimental import pallas as pl
from jax.experimental.pallas import tpu as pltpu

_LANE = 128


def _round_up(x, m):
    return ((x + m - 1) // m) * m


def _device_kind():
    try:
        return jax.devices()[0].device_kind.lower()
    except Exception:
        return ""


def _pick_tile(n, max_cin, max_cout, budget_bytes, target=2048):
    """Row tile tm (multiple of 8) and padded per-batch point count n_pad.

    Tiles never straddle a batch boundary (tm divides n_pad) so the fused
    last-layer max-pool can stay resident per batch.  If n has no suitable
    divisor the batch is zero-padded up to a multiple of tm; padded rows are
    masked in-kernel (never a single giant un-pipelined block).
    """
    bytes_per_row = 2 * 2 * max_cin + 2 * 2 * max_cout        # dbl-buffered bf16 in+out tiles
    fixed = 2 * 2 * max_cin * max_cout + 6 * 4 * max_cout     # dbl-buffered weight + ss/scratch
    cap = max(8, (budget_bytes - fixed) // max(bytes_per_row, 1))
    target = max(8, (min(target, cap) // 8) * 8)
    n8 = _round_up(n, 8)
    if n8 <= target:
        return n8, n8                                         # one tile per batch
    tm = target
    while tm >= 8 and n % tm:
        tm -= 8
    if tm >= 8:
        return tm, n                                          # exact divisor, no padding
    return target, _round_up(n, target)                       # pad + mask tail rows


def _layer_kernel(*refs, fuse_bn, last, tiles_per_batch, n_valid, needs_mask):
    """One MLP layer (1x1 Conv2d) on a row tile of the [B*N_pad, C] slab.

    If fuse_bn: applies the previous layer's folded BatchNorm (scale/shift) +
    ReLU to the incoming bf16 pre-BN activation before the matmul.
    Always: matmul (bf16 MXU operands, f32 accumulation) and per-channel
    sum / sum-of-squares accumulated in f32 VMEM scratch, written to the
    per-core-group stats output only on the group's last grid step.
    If last: keeps a resident per-batch running max AND min of the pre-BN f32
    accumulator in scratch (written once per batch) instead of writing the
    activation to HBM.  Otherwise writes the bf16 pre-BN activation tile.
    """
    idx = 0
    a = refs[idx][...]; idx += 1
    if fuse_bn:
        ss = refs[idx][...]; idx += 1           # [2, Cin]: row 0 = scale, row 1 = shift
        a = a.astype(ss.dtype) * ss[0:1, :] + ss[1:2, :]
        a = jnp.maximum(a, 0).astype(jnp.bfloat16)            # ReLU; bf16 for the MXU
    w = refs[idx][...]; idx += 1                                # [Cin, Cout] bf16
    acc = jnp.dot(a, w, preferred_element_type=jnp.float32)    # [tm, Cout] f32

    out_ref = refs[idx]; idx += 1     # h tile (middle) or per-batch max/min (last)
    stats_ref = refs[idx]; idx += 1   # [1, 2, Cout] per-core-group (sum, sumsq)
    sum_sc = refs[idx]; idx += 1      # [1, Cout] f32 scratch
    sq_sc = refs[idx]; idx += 1       # [1, Cout] f32 scratch
    if last:
        mx_sc = refs[idx]; idx += 1   # [1, Cout] f32 scratch (running per-batch max)
        mn_sc = refs[idx]; idx += 1   # [1, Cout] f32 scratch (running per-batch min)

    t = pl.program_id(1)
    nt = pl.num_programs(1)

    if needs_mask:
        rows = acc.shape[0]
        local = (t % tiles_per_batch) * rows + jax.lax.broadcasted_iota(
            jnp.int32, (rows, 1), 0)
        valid = local < n_valid
        acc_s = jnp.where(valid, acc, 0.0)
    else:
        valid = None
        acc_s = acc

    @pl.when(t == 0)
    def _():
        sum_sc[...] = jnp.zeros(sum_sc.shape, sum_sc.dtype)
        sq_sc[...] = jnp.zeros(sq_sc.shape, sq_sc.dtype)

    sum_sc[...] += jnp.sum(acc_s, axis=0, keepdims=True)
    sq_sc[...] += jnp.sum(acc_s * acc_s, axis=0, keepdims=True)

    @pl.when(t == nt - 1)
    def _():
        stats_ref[0] = jnp.concatenate([sum_sc[...], sq_sc[...]], axis=0)

    if last:
        acc_mx = acc if valid is None else jnp.where(valid, acc, -jnp.inf)
        acc_mn = acc if valid is None else jnp.where(valid, acc, jnp.inf)
        bt = t % tiles_per_batch

        @pl.when(bt == 0)
        def _():
            mx_sc[...] = jnp.full(mx_sc.shape, -jnp.inf, mx_sc.dtype)
            mn_sc[...] = jnp.full(mn_sc.shape, jnp.inf, mn_sc.dtype)

        mx_sc[...] = jnp.maximum(mx_sc[...], jnp.max(acc_mx, axis=0, keepdims=True))
        mn_sc[...] = jnp.minimum(mn_sc[...], jnp.min(acc_mn, axis=0, keepdims=True))

        @pl.when(bt == tiles_per_batch - 1)
        def _():
            out_ref[0] = jnp.concatenate([mx_sc[...], mn_sc[...]], axis=0)
    else:
        out_ref[...] = acc.astype(out_ref.dtype)


def _layer_call(inputs, c_in, c_out, *, G, T, tm, rows_pad, B, tiles_per_batch,
                n_valid, needs_mask, fuse_bn, last, vmem_limit):
    kernel = functools.partial(
        _layer_kernel, fuse_bn=fuse_bn, last=last,
        tiles_per_batch=tiles_per_batch, n_valid=n_valid, needs_mask=needs_mask)

    row_map = lambda g, t: (g * T + t, 0)
    const_map = lambda g, t: (0, 0)

    in_specs = [pl.BlockSpec((tm, c_in), row_map)]
    if fuse_bn:
        in_specs.append(pl.BlockSpec((2, c_in), const_map))
    in_specs.append(pl.BlockSpec((c_in, c_out), const_map))

    if last:
        bpg = B // G  # batches per core-group (batch-aligned split)
        out0_shape = jax.ShapeDtypeStruct((B, 2, c_out), jnp.float32)
        out0_spec = pl.BlockSpec(
            (1, 2, c_out), lambda g, t: (g * bpg + t // tiles_per_batch, 0, 0))
        scratch = [pltpu.VMEM((1, c_out), jnp.float32) for _ in range(4)]
    else:
        out0_shape = jax.ShapeDtypeStruct((rows_pad, c_out), jnp.bfloat16)
        out0_spec = pl.BlockSpec((tm, c_out), row_map)
        scratch = [pltpu.VMEM((1, c_out), jnp.float32) for _ in range(2)]

    stats_shape = jax.ShapeDtypeStruct((G, 2, c_out), jnp.float32)
    stats_spec = pl.BlockSpec((1, 2, c_out), lambda g, t: (g, 0, 0))

    return pl.pallas_call(
        kernel,
        grid=(G, T),
        in_specs=in_specs,
        out_shape=(out0_shape, stats_shape),
        out_specs=(out0_spec, stats_spec),
        scratch_shapes=scratch,
        compiler_params=pltpu.CompilerParams(
            # leading batch-group axis is sharded across TensorCores on v7x;
            # the row-tile axis carries the stats / max accumulators.
            dimension_semantics=("parallel", "arbitrary"),
            vmem_limit_bytes=vmem_limit),
    )(*inputs)


def pointnet_sa_group_all(xyz, points, params, eps=1e-5, row_tile_target=2048):
    """Forward pass of PointNetSetAbstraction with group_all=True.

    xyz    : [B, 3, N]  point positions
    points : [B, D, N]  point features (or None)
    params : list of dicts with 'w' [Cout, Cin], 'gamma', 'beta' per layer
             ('b' is accepted but unused: the conv bias is exactly cancelled
             by training-mode BatchNorm's mean subtraction)
    returns (new_xyz [B, 3, 1], new_points [B, Cout_last, 1])
    """
    B, _, N = xyz.shape
    D = 0 if points is None else points.shape[1]
    cin0 = 3 + D
    cin0_pad = _round_up(cin0, 8)

    n_layers = len(params)
    c_outs = [p["w"].shape[0] for p in params]
    c_pads = [max(_LANE, _round_up(c, _LANE)) for c in c_outs]

    kind = _device_kind()
    is_v7 = ("v7" in kind) or ("7x" in kind)
    vmem_limit = (48 if is_v7 else 64) * 1024 * 1024
    use_bf16_ep = ("v6" in kind) or is_v7          # bf16 VPU only where native
    ep_dtype = jnp.bfloat16 if use_bf16_ep else jnp.float32

    max_cin = max([cin0_pad] + c_pads[:-1])
    max_cout = max(c_pads)
    tm, n_pad = _pick_tile(N, max_cin, max_cout, vmem_limit // 2,
                           target=row_tile_target)
    tiles_per_batch = n_pad // tm
    needs_mask = n_pad != N
    rows_pad = B * n_pad
    cnt = float(B * N)                              # true sample count for BN stats

    G = 2 if (B >= 2 and B % 2 == 0) else 1         # megacore-friendly, batch-aligned
    T = (B // G) * tiles_per_batch

    # ---- pack xyz (+ point features) into one lane-contiguous bf16 slab ----
    slab = jnp.zeros((B, n_pad, cin0_pad), jnp.bfloat16)
    slab = slab.at[:, :N, :3].set(jnp.transpose(xyz, (0, 2, 1)).astype(jnp.bfloat16))
    if points is not None:
        slab = slab.at[:, :N, 3:cin0].set(
            jnp.transpose(points, (0, 2, 1)).astype(jnp.bfloat16))
    a = slab.reshape(rows_pad, cin0_pad)

    # ---- parameter prep (tiny, host/XLA side) -------------------------------
    weights, gammas, betas = [], [], []
    for li, p in enumerate(params):
        c_out, c_in = p["w"].shape
        c_in_pad = cin0_pad if li == 0 else c_pads[li - 1]
        w = jnp.zeros((c_in_pad, c_pads[li]), jnp.float32)
        w = w.at[:c_in, :c_out].set(jnp.transpose(p["w"].astype(jnp.float32)))
        weights.append(w.astype(jnp.bfloat16))
        gammas.append(jnp.ones((c_pads[li],), jnp.float32).at[:c_out].set(
            p["gamma"].astype(jnp.float32)))
        betas.append(jnp.zeros((c_pads[li],), jnp.float32).at[:c_out].set(
            p["beta"].astype(jnp.float32)))

    def folded(stats_g, gamma, beta):
        s = jnp.sum(stats_g, axis=0)                        # combine core-group partials
        mean = s[0] / cnt
        var = jnp.maximum(s[1] / cnt - mean * mean, 0.0)    # biased batch var, clamped
        scale = gamma * jax.lax.rsqrt(var + eps)
        shift = beta - mean * scale
        return scale, shift

    ss = None
    maxmin = None
    scale = shift = None
    for li in range(n_layers):
        fuse = li > 0
        last = li == n_layers - 1
        c_in = cin0_pad if li == 0 else c_pads[li - 1]
        c_out = c_pads[li]
        inputs = [a] + ([ss] if fuse else []) + [weights[li]]
        out, stats = _layer_call(
            inputs, c_in, c_out, G=G, T=T, tm=tm, rows_pad=rows_pad, B=B,
            tiles_per_batch=tiles_per_batch, n_valid=N, needs_mask=needs_mask,
            fuse_bn=fuse, last=last, vmem_limit=vmem_limit)
        scale, shift = folded(stats, gammas[li], betas[li])
        if last:
            maxmin = out                                     # [B, 2, C]: max, min of pre-BN acc
        else:
            a = out                                          # bf16 pre-BN activation slab
            ss = jnp.stack([scale, shift]).astype(ep_dtype)  # consumed by the next kernel

    # ---- last-layer epilogue on the tiny [B, C] pooled tensors --------------
    # max_p relu(s*x_p + t) = relu(s*max_p x + t) if s >= 0 else relu(s*min_p x + t)
    mx = maxmin[:, 0, :]
    mn = maxmin[:, 1, :]
    pre = jnp.where(scale >= 0.0, mx * scale, mn * scale) + shift
    pooled = jnp.maximum(pre, 0.0)[:, :c_outs[-1]]

    new_xyz = jnp.zeros((B, 3, 1), dtype=xyz.dtype)
    new_points = pooled.astype(jnp.float32)[:, :, None]
    return new_xyz, new_points


# --------------------------- pure-JAX reference ------------------------------
def reference_forward(xyz, points, params, eps=1e-5):
    B, _, N = xyz.shape
    feat = jnp.transpose(xyz, (0, 2, 1))
    if points is not None:
        feat = jnp.concatenate([feat, jnp.transpose(points, (0, 2, 1))], axis=-1)
    h = feat.reshape(B * N, -1).astype(jnp.float32)
    for p in params:
        h = h @ p["w"].astype(jnp.float32).T + p["b"].astype(jnp.float32)
        mean = h.mean(axis=0)
        var = jnp.mean((h - mean) ** 2, axis=0)             # biased (training-mode BN)
        h = (h - mean) * jax.lax.rsqrt(var + eps) * p["gamma"] + p["beta"]
        h = jnp.maximum(h, 0.0)
    pooled = h.reshape(B, N, -1).max(axis=1)
    new_xyz = jnp.zeros((B, 3, 1), xyz.dtype)
    return new_xyz, pooled[:, :, None]


def init_params(key, in_channel, mlp):
    """Deterministic synthetic init matching nn.Conv2d(Cin,Cout,1)+BatchNorm2d."""
    params = []
    last = in_channel
    for out in mlp:
        key, k1, k2 = jax.random.split(key, 3)
        params.append(dict(
            w=jax.random.normal(k1, (out, last), jnp.float32) * 0.1,
            b=jax.random.normal(k2, (out,), jnp.float32) * 0.1,   # cancelled by BN
            gamma=jnp.ones((out,), jnp.float32),
            beta=jnp.zeros((out,), jnp.float32),
        ))
        last = out
    return params


if __name__ == "__main__":
    key = jax.random.PRNGKey(0)

    # Case 1: even batch (exercises the 2-way core-group split), xyz + features.
    B, N, D = 2, 16, 4
    mlp = [16, 32]
    kx, kp, kw, key = jax.random.split(key, 4)
    xyz = jax.random.normal(kx, (B, 3, N), jnp.float32)
    points = jax.random.normal(kp, (B, D, N), jnp.float32)
    params = init_params(kw, 3 + D, mlp)

    new_xyz, new_points = pointnet_sa_group_all(xyz, points, params)
    jax.block_until_ready((new_xyz, new_points))
    _, ref_points = reference_forward(xyz, points, params)
    assert new_xyz.shape == (B, 3, 1), new_xyz.shape
    assert new_points.shape == (B, mlp[-1], 1), new_points.shape
    assert bool(jnp.all(jnp.isfinite(new_points)))
    assert bool(jnp.allclose(new_points, ref_points, atol=1e-1, rtol=1e-1)), (
        float(jnp.max(jnp.abs(new_points - ref_points))))

    # Case 2: odd batch, N not a multiple of 8 (exercises the masked padded
    # rows), no point features, three MLP layers.
    B2, N2 = 3, 12
    mlp2 = [8, 16, 32]
    kx2, kw2, key = jax.random.split(key, 3)
    xyz2 = jax.random.normal(kx2, (B2, 3, N2), jnp.float32)
    params2 = init_params(kw2, 3, mlp2)

    new_xyz2, new_points2 = pointnet_sa_group_all(xyz2, None, params2)
    jax.block_until_ready((new_xyz2, new_points2))
    _, ref_points2 = reference_forward(xyz2, None, params2)
    assert new_xyz2.shape == (B2, 3, 1), new_xyz2.shape
    assert new_points2.shape == (B2, mlp2[-1], 1), new_points2.shape
    assert bool(jnp.all(jnp.isfinite(new_points2)))
    assert bool(jnp.allclose(new_points2, ref_points2, atol=1e-1, rtol=1e-1)), (
        float(jnp.max(jnp.abs(new_points2 - ref_points2))))

    print("KERNEL_OK")
</pallas_src>

<mosaic_0001>
module attributes {stable_mosaic.version = 11 : i64} {
  func.func @_layer_kernel(%arg0: i32, %arg1: i32, %arg2: memref<16x8xbf16, #tpu.memory_space<vmem>>, %arg3: memref<8x128xbf16, #tpu.memory_space<vmem>>, %arg4: memref<16x128xbf16, #tpu.memory_space<vmem>>, %arg5: memref<1x2x128xf32, #tpu.memory_space<vmem>>, %arg6: memref<1x128xf32, #tpu.memory_space<vmem>>, %arg7: memref<1x128xf32, #tpu.memory_space<vmem>>) attributes {dimension_semantics = [#tpu.dimension_semantics<parallel>, #tpu.dimension_semantics<arbitrary>], iteration_bounds = array<i64: 2, 1>, scalar_prefetch = 0 : i64, scratch_operands = 2 : i64, tpu.core_type = #tpu.core_type<tc>, window_params = [{transform_indices = @transform_0, window_bounds = array<i64: 16, 8>}, {pipeline_mode = #tpu.pipeline_mode<synchronous>, transform_indices = @transform_1, window_bounds = array<i64: 8, 128>}, {transform_indices = @transform_2, window_bounds = array<i64: 16, 128>}, {transform_indices = @transform_3, window_bounds = array<i64: 1, 2, 128>}]} {
    %c0 = arith.constant 0 : index
    %c0_0 = arith.constant 0 : index
    %0 = vector.load %arg2[%c0, %c0_0] : memref<16x8xbf16, #tpu.memory_space<vmem>>, vector<16x8xbf16>
    %c0_1 = arith.constant 0 : index
    %c0_2 = arith.constant 0 : index
    %1 = vector.load %arg3[%c0_1, %c0_2] : memref<8x128xbf16, #tpu.memory_space<vmem>>, vector<8x128xbf16>
    %cst = arith.constant dense<0.000000e+00> : vector<16x128xf32>
    %2 = tpu.matmul %0, %1, %cst {dimension_numbers = #tpu.dot_dimension_numbers<[1], [0], [0], [1], [0, 0, 1, 1], [], []>} : vector<16x8xbf16>, vector<8x128xbf16>, vector<16x128xf32> -> vector<16x128xf32>
    %c0_i32 = arith.constant 0 : i32
    %3 = arith.cmpi eq, %arg1, %c0_i32 : i32
    %4 = arith.extui %3 : i1 to i32
    %c0_i32_3 = arith.constant 0 : i32
    %5 = arith.cmpi ne, %4, %c0_i32_3 : i32
    scf.if %5 {
      %cst_18 = arith.constant 0.000000e+00 : f32
      %22 = vector.broadcast %cst_18 : f32 to vector<1x128xf32>
      %c0_19 = arith.constant 0 : index
      %c0_20 = arith.constant 0 : index
      %23 = vector.load %arg6[%c0_19, %c0_20] : memref<1x128xf32, #tpu.memory_space<vmem>>, vector<1x128xf32>
      tpu.vector_store %arg6[%c0_19, %c0_20], %22 {strides = array<i32>} : memref<1x128xf32, #tpu.memory_space<vmem>>, vector<1x128xf32>,
      %cst_21 = arith.constant 0.000000e+00 : f32
      %24 = vector.broadcast %cst_21 : f32 to vector<1x128xf32>
      %c0_22 = arith.constant 0 : index
      %c0_23 = arith.constant 0 : index
      %25 = vector.load %arg7[%c0_22, %c0_23] : memref<1x128xf32, #tpu.memory_space<vmem>>, vector<1x128xf32>
      tpu.vector_store %arg7[%c0_22, %c0_23], %24 {strides = array<i32>} : memref<1x128xf32, #tpu.memory_space<vmem>>, vector<1x128xf32>,
    } else {
    }
    %c0_4 = arith.constant 0 : index
    %c0_5 = arith.constant 0 : index
    %6 = vector.load %arg6[%c0_4, %c0_5] : memref<1x128xf32, #tpu.memory_space<vmem>>, vector<1x128xf32>
    %cst_6 = arith.constant dense<0.000000e+00> : vector<128xf32>
    %7 = vector.multi_reduction <add>, %2, %cst_6 [0] : vector<16x128xf32> to vector<128xf32>
    %8 = vector.shape_cast %7 : vector<128xf32> to vector<1x128xf32>
    %9 = arith.addf %6, %8 : vector<1x128xf32>
    %c0_7 = arith.constant 0 : index
    %c0_8 = arith.constant 0 : index
    %10 = vector.load %arg6[%c0_7, %c0_8] : memref<1x128xf32, #tpu.memory_space<vmem>>, vector<1x128xf32>
    tpu.vector_store %arg6[%c0_7, %c0_8], %9 {strides = array<i32>} : memref<1x128xf32, #tpu.memory_space<vmem>>, vector<1x128xf32>,
    %c0_9 = arith.constant 0 : index
    %c0_10 = arith.constant 0 : index
    %11 = vector.load %arg7[%c0_9, %c0_10] : memref<1x128xf32, #tpu.memory_space<vmem>>, vector<1x128xf32>
    %12 = arith.mulf %2, %2 : vector<16x128xf32>
    %cst_11 = arith.constant dense<0.000000e+00> : vector<128xf32>
    %13 = vector.multi_reduction <add>, %12, %cst_11 [0] : vector<16x128xf32> to vector<128xf32>
    %14 = vector.shape_cast %13 : vector<128xf32> to vector<1x128xf32>
    %15 = arith.addf %11, %14 : vector<1x128xf32>
    %c0_12 = arith.constant 0 : index
    %c0_13 = arith.constant 0 : index
    %16 = vector.load %arg7[%c0_12, %c0_13] : memref<1x128xf32, #tpu.memory_space<vmem>>, vector<1x128xf32>
    tpu.vector_store %arg7[%c0_12, %c0_13], %15 {strides = array<i32>} : memref<1x128xf32, #tpu.memory_space<vmem>>, vector<1x128xf32>,
    %c0_i32_14 = arith.constant 0 : i32
    %17 = arith.cmpi eq, %arg1, %c0_i32_14 : i32
    %18 = arith.extui %17 : i1 to i32
    %c0_i32_15 = arith.constant 0 : i32
    %19 = arith.cmpi ne, %18, %c0_i32_15 : i32
    scf.if %19 {
      %c0_18 = arith.constant 0 : index
      %c0_19 = arith.constant 0 : index
      %22 = vector.load %arg6[%c0_18, %c0_19] : memref<1x128xf32, #tpu.memory_space<vmem>>, vector<1x128xf32>
      %c0_20 = arith.constant 0 : index
      %c0_21 = arith.constant 0 : index
      %23 = vector.load %arg7[%c0_20, %c0_21] : memref<1x128xf32, #tpu.memory_space<vmem>>, vector<1x128xf32>
      %24 = tpu.concatenate %22, %23 in 0 : vector<1x128xf32>, vector<1x128xf32> -> vector<2x128xf32>
      %c0_22 = arith.constant 0 : index
      %c0_23 = arith.constant 0 : index
      %c0_24 = arith.constant 0 : index
      %25 = vector.load %arg5[%c0_22, %c0_23, %c0_24] : memref<1x2x128xf32, #tpu.memory_space<vmem>>, vector<1x2x128xf32>
      %26 = vector.shape_cast %25 : vector<1x2x128xf32> to vector<2x128xf32>
      %27 = vector.shape_cast %24 : vector<2x128xf32> to vector<1x2x128xf32>
      tpu.vector_store %arg5[%c0_22, %c0_23, %c0_24], %27 {strides = array<i32>} : memref<1x2x128xf32, #tpu.memory_space<vmem>>, vector<1x2x128xf32>,
    } else {
    }
    %20 = arith.truncf %2 : vector<16x128xf32> to vector<16x128xbf16>
    %c0_16 = arith.constant 0 : index
    %c0_17 = arith.constant 0 : index
    %21 = vector.load %arg4[%c0_16, %c0_17] : memref<16x128xbf16, #tpu.memory_space<vmem>>, vector<16x128xbf16>
    tpu.vector_store %arg4[%c0_16, %c0_17], %20 {strides = array<i32>} : memref<16x128xbf16, #tpu.memory_space<vmem>>, vector<16x128xbf16>,
    return
  }
  func.func @transform_0(%arg0: i32, %arg1: i32) -> (i32, i32) {
    %c1_i32 = arith.constant 1 : i32
    %0 = arith.muli %arg0, %c1_i32 : i32
    %1 = arith.addi %0, %arg1 : i32
    %c0_i32 = arith.constant 0 : i32
    %c0_i32_0 = arith.constant 0 : i32
    return %1, %c0_i32 : i32, i32
  }
  func.func @transform_1(%arg0: i32, %arg1: i32) -> (i32, i32) {
    %c0_i32 = arith.constant 0 : i32
    %c0_i32_0 = arith.constant 0 : i32
    %c0_i32_1 = arith.constant 0 : i32
    return %c0_i32, %c0_i32_0 : i32, i32
  }
  func.func @transform_2(%arg0: i32, %arg1: i32) -> (i32, i32) {
    %c1_i32 = arith.constant 1 : i32
    %0 = arith.muli %arg0, %c1_i32 : i32
    %1 = arith.addi %0, %arg1 : i32
    %c0_i32 = arith.constant 0 : i32
    %c0_i32_0 = arith.constant 0 : i32
    return %1, %c0_i32 : i32, i32
  }
  func.func @transform_3(%arg0: i32, %arg1: i32) -> (i32, i32, i32) {
    %c0_i32 = arith.constant 0 : i32
    %c0_i32_0 = arith.constant 0 : i32
    %c0_i32_1 = arith.constant 0 : i32
    return %arg0, %c0_i32, %c0_i32_0 : i32, i32, i32
  }
}

</mosaic_0001>

<bundles_post_ra>
// kernel: tpu_custom_call.1
= control target key start
LH: loop header
LB: loop body
LE: loop exit
PB: predicated region body
PF: predicated region fallthrough
CT: control target
= control target key end

     0   :  { %9 = vsyncpa [#allocation5], 0  ;;  %s1089_s0 = inlined_call_operand.hbm [shape: bf16[32,8], index: 0, kind: input, shape index: {}]   ;;  %s1090_s1 = inlined_call_operand.hbm [shape: bf16[8,128], index: 1, kind: input, shape index: {}]   ;;  %s1091_s2 = inlined_call_operand.hbm [shape: bf16[32,128], index: 2, kind: output, shape index: {0}]   ;;  %s1092_s3 = inlined_call_operand.hbm [shape: f32[2,2,128], index: 3, kind: output, shape index: {1}]  }
   0x1   :  { %11 = vsyncpa [#allocation5 + $0x1], 0 }
   0x2   :  { %12 = vsyncpa [#allocation8], 0 }
   0x3   :  { %13 = vsyncpa [#allocation6], 0 }
   0x4   :  { %15 = vsyncpa [#allocation6 + $0x1], 0 }
   0x5   :  { %16 = vsyncpa [#allocation11], 0 }
   0x6   :  { %18 = vsyncpa [#allocation11 + $0x1], 0  ;;  %s837_s12 = smov 0   ;;  %s839_s13 = smov 0  }
   0x7   :  { %s841_s14 = smov 0   ;;  %s843_s15 = smov 0  }
   0x8   :  { %s845_s16 = smov 0   ;;  %s847_s17 = smov 0  }
   0x9 LB: > { %s502_s18 = sadd.s32 4294967295, %s805_s17   ;;  %s503_s19 = sadd.s32 4294967294, %s805_s17   ;;  %s805_s17 = sphi %s847_s17, %s24_s17   ;;  %s801_s16 = sphi %s845_s16, %s1120_s16   ;;  %s797_s15 = sphi %s843_s15, %s1119_s15   ;;  %s793_s14 = sphi %s841_s14, %s1118_s14   ;;  %s789_s13 = sphi %s839_s13, %s1117_s13   ;;  %s785_s12 = sphi %s837_s12, %s1116_s12  }
   0xa   : > { %s45_s20 = sadd.s32 1, %s793_s14  ;;  %p52_p0 = scmp.ne.s32.totalorder %s793_s14, %s789_s13 }
   0xb   : > { %p53_p1 = scmp.eq.s32.totalorder %s805_s17, 0  ;;  %p58_p2 = scmp.ne.s32.totalorder %s789_s13, %s785_s12 }
   0xc   : > { %p875_p3 = scmp.eq.s32.totalorder %s502_s18, 0  ;;  %p105_p4 = scmp.eq.s32.totalorder %s502_s18, 1 }
   0xd   : > { %p879_p5 = por %p53_p1, %p52_p0  ;;  %p111_p6 = scmp.eq.s32.totalorder %s503_s19, 1 }
   0xe   : > { %s1099_s21 = scalar_select %p875_p3, 1, 0 }
   0xf   : > { %p885_p7 = por %p875_p3, %p58_p2  ;;  %p889_p8 = por %p105_p4, %p52_p0 }
  0x10   : > { %p893_p9 = por %p111_p6, %p58_p2  ;;  %p504_p10 = scmp.ge.s32.totalorder %s805_s17, 1 }
  0x11   : > { %s1101_s23 = scalar_select %p885_p7, 1, 0 }
  0x12   : > { %s1102_s24 = scalar_select %p889_p8, 1, 0 }
  0x13   : > { %s1103_s25 = scalar_select %p893_p9, 1, 0 }
  0x14   : > { %p144_p11 = scmp.lt.s32.totalorder %s805_s17, 3  ;;  %s807_s27 = smov [#allocation7]  }
  0x15   : > { %s157_s28 = sshll.u32 %s807_s27, 4  ;;  %p570_p1 = scmp.lt.s32.totalorder %s805_s17, 2  ;;  %s158_s28 = int_to_ptr.vmem [resolvable:$true] %s157_s28 }
  0x16   : > { %p900_p13 = pnand %p504_p10, %p144_p11  ;;  %s36_s4 = sadd.s32 1, %s801_s16 }
  0x17   : > { %p909_p4 = pnand %p570_p1, %p879_p5  ;;  %p920_p6 = scmp.ge.s32.totalorder %s36_s4, 2 }
  0x18   : > { %s1104_s26 = scalar_select %p900_p13, 1, 0 }
  0x19   : > { %p554_p0 = pneg %p900_p13  ;;  %s168_s6 = sand.u32 1, %s793_s14  }
  0x1a   : > { %s1105_s29 = scalar_select %p909_p4, 1, 0 }
  0x1b   : > { %p915_p2 = pnand %p554_p0, %p875_p3  ;;  %s629_s9 = scalar_lea.hbm %s1090_s1, 64 }
  0x1c   : > { %s1107_s5 = scalar_select %p920_p6, 1, 0 }
  0x1d   : > { %p630_p5 = scmp.ne.s32.totalorder %s1090_s1, %s629_s9  ;;  %p631_p10 = pneg %p915_p2 }
  0x1e   : > { %p636_p0 = scmp.lt.u32.totalorder %s629_s9, %s1090_s1 }
  0x1f   : > { %p632_p11 = pnand %p631_p10, %p630_p5 }
  0x21   : > { %p633_p1 = pneg %p632_p11 }
  0x23   : > { %p638_p12 = pnand %p636_p0, %p633_p1 }
  0x25   : > { %641 = shalt.err (!%p638_p12)
}
  0x26   : > { %s642_s22 = scalar_lea.vmem %s158_s28, 64  ;;  %p650_p7 = scmp.lt.s32.totalorder %s158_s28, %s158_s28 }
  0x27   : > { %p643_p9 = scmp.ne.s32.totalorder %s158_s28, %s642_s22  ;;  %p651_p13 = scmp.lt.s32.totalorder %s642_s22, %s642_s22 }
  0x29   : > { %p645_p8 = pnand %p643_p9, %p631_p10  ;;  %p652_p4 = por %p651_p13, %p650_p7 }
  0x2b   : > { %p646_p3 = pneg %p645_p8 }
  0x2d   : > { %p653_p6 = pnand %p652_p4, %p646_p3 }
  0x2f   : > { %656 = shalt.err (!%p653_p6)
}
  0x30   : > { %557 = dma.hbm_to_vmem [thread:$0]  (!%p915_p2), %s1090_s1, 64, %s158_s28, [#allocation8]  }
  0x31   : > { %p1108_p9 = scmp.ne.s32.totalorder %s1107_s5, 0  ;;  %s507_s8 = sshll.u32 %s168_s6, 3 }
  0x32   : > { %s527_s10 = sshll.u32 %s801_s16, 7  ;;  %s172_s19 = scalar_lea.vmem [#allocation4], %s507_s8 }
  0x33   : > { %s1122_s4 = smov (%p1108_p9, %s36_s4), 0  ;;  %s951_s18 = scalar_lea.hbm %s1089_s0, %s527_s10 }
  0x34   : > { %s42_s9 = ssub.s32 %s801_s16, %s1122_s4  ;;  %s180_s22 = sshll.u32 %s172_s19, 4  ;;  %s958_s22 = int_to_ptr.vmem [resolvable:$true] %s180_s22 }
  0x35   : > { %p43_p3 = scmp.eq.s32.totalorder %s42_s9, 0  ;;  %s960_s5 = scalar_lea.sflag [#allocation5], %s168_s6 }
  0x36   : > { %s657_s27 = scalar_lea.hbm %s951_s18, 128  ;;  %p1109_p8 = scmp.ne.s32.totalorder %s1105_s29, 0 }
  0x37   : > { %s956_s28 = scalar_select %p43_p3, %s793_s14, %s45_s20  }
  0x38   : > { %p658_p7 = scmp.ne.s32.totalorder %s951_s18, %s657_s27  ;;  %p659_p12 = pneg %p1109_p8 }
  0x39   : > { %s662_s8 = scalar_lea.hbm %s1089_s0, 256  ;;  %p663_p2 = scmp.lt.u32.totalorder %s951_s18, %s1089_s0 }
  0x3a   : > { %p660_p13 = pnand %p659_p12, %p658_p7  ;;  %p664_p6 = scmp.lt.u32.totalorder %s662_s8, %s657_s27 }
  0x3b   : > { %p666_p10 = scmp.lt.u32.totalorder %s657_s27, %s951_s18 }
  0x3c   : > { %p661_p4 = pneg %p660_p13  ;;  %p665_p5 = por %p664_p6, %p663_p2 }
  0x3e   : > { %p667_p11 = por %p666_p10, %p665_p5 }
  0x40   : > { %p668_p1 = pnand %p667_p11, %p661_p4 }
  0x42   : > { %671 = shalt.err (!%p668_p1)
}
  0x43   : > { %s672_s20 = scalar_lea.vmem %s958_s22, 128  ;;  %s808_s6 = smov [#allocation4]  }
  0x44   : > { %p673_p0 = scmp.ne.s32.totalorder %s958_s22, %s672_s20  ;;  %s677_s11 = sshll.u32 %s808_s6, 4  ;;  %s678_s11 = int_to_ptr.vmem [resolvable:$false] %s677_s11 }
  0x45   : > { %s679_s19 = scalar_lea.vmem %s678_s11, 256  ;;  %p680_p7 = scmp.lt.s32.totalorder %s958_s22, %s678_s11 }
  0x46   : > { %p675_p9 = pnand %p673_p0, %p659_p12  ;;  %p681_p13 = scmp.lt.s32.totalorder %s679_s19, %s672_s20 }
  0x48   : > { %p676_p3 = pneg %p675_p9  ;;  %p682_p2 = por %p681_p13, %p680_p7 }
  0x4a   : > { %p683_p6 = pnand %p682_p2, %p676_p3 }
  0x4c   : > { %686 = shalt.err (!%p683_p6)
}
  0x4d   : > { %s809_s27 = smov 64   ;;  %s810_s7 = smov 4  }
  0x4e   : > { %561 = dma.hbm_to_vmem [thread:$0]  (!%p1109_p8), %s951_s18, 128, %s958_s22, %s960_s5, %s809_s27, %s809_s27, %s810_s7  }
  0x4f   : > { %p1110_p12 = scmp.ne.s32.totalorder %s1104_s26, 0 }
  0x50   : > { %s991_s9 = sand.u32 (!%p1110_p12), 1, %s789_s13   ;;  %p1111_p4 = scmp.ne.s32.totalorder (!%p1110_p12), %s1101_s23, 0 }
  0x51   : > { %192 = sbr.rel (%p1110_p12) target bundleno = 364 (0x16c), region = 28  ;;  %s511_s8 = sshll.u32 (!%p1110_p12), %s991_s9, 3 }
  0x52   : > { %s195_s10 = scalar_lea.sflag (!%p1110_p12), [#allocation5], %s991_s9  ;;  %s198_s30 = scalar_lea.vmem (!%p1110_p12), [#allocation4], %s511_s8 }
  0x58   : > { %768 = dma.done.wait (%p1111_p4), %s195_s10, 128  }
  0x59   : > { %770 = vsyncadd (%p1111_p4), %s195_s10, 4294967168  ;;  %p1112_p5 = scmp.ne.s32.totalorder %s1099_s21, 0 }
  0x5b   : > { %772 = dma.done.wait (%p1112_p5), [#allocation8], 64  }
  0x5c   : > { %774 = vsyncadd (%p1112_p5), [#allocation8], 4294967232  ;;  %v811_v0 = vmov 0.0   ;;  %vm812_vm0 = vmmov 0   ;;  %vm247_vm1 = vcmask 1043456   ;;  %v628_v3 = vld [vmem:[%s198_s30] sm:$0xff]  }
  0x5d   : > { %538 = vmatprep.subr.bf16.mxu0 %v811_v0  ;;  %296 = vst [vmem:[#allocation2] sm:$0x1] %v811_v0  ;;  %297 = vst [vmem:[#allocation3] sm:$0x1] %v811_v0  ;;  %540 = vmatprep.mubr.msk.bf16.mxu0 %vm812_vm0, %v811_v0  ;;  %v237_v1 = vld [vmem:[#allocation7] sm:$0xf] }
  0x5e   : > { %v249_v2 = vsel %vm247_vm1, %v237_v1, 0  ;;  %vm243_vm2 = vcmask 64512   ;;  %s222_s23 = scalar_lea.vmem [#allocation9], %s511_s8  ;;  %s530_s29 = sshll.u32 %s797_s15, 7 }
  0x5f   : > { %539 = vmatpush3.bf16.msra.mxu0 %v249_v2  ;;  %s364_s26 = sshll.u32 %s222_s23, 4  ;;  %s1009_s22 = scalar_lea.hbm %s1091_s2, %s530_s29  ;;  %s1004_s26 = int_to_ptr.vmem [resolvable:$true] %s364_s26 }
  0x60   : > { %s345_s5 = scalar_lea.sflag [#allocation6], %s991_s9  ;;  %s687_s20 = scalar_lea.vmem %s1004_s26, 128 }
  0x61   : > { %p688_p8 = scmp.ne.s32.totalorder %s1004_s26, %s687_s20  ;;  %p1113_p10 = scmp.ne.s32.totalorder %s1102_s24, 0 }
  0x62   : > { %541 = vmatmul.mubr.msk.bf16.vlgmr.msra.gmra.mrb[0].mxu0 %vm243_vm2, %v628_v3  ;;  %s813_s6 = smov [#allocation9]  }
  0x63   : > { %p689_p11 = pnand %p688_p8, %p1113_p10  ;;  %s691_s11 = sshll.u32 %s813_s6, 4  ;;  %s692_s11 = int_to_ptr.vmem [resolvable:$false] %s691_s11 }
  0x64   : > { %s693_s19 = scalar_lea.vmem %s692_s11, 256  ;;  %p694_p0 = scmp.lt.s32.totalorder %s1004_s26, %s692_s11 }
  0x65   : > { %p690_p1 = pneg %p689_p11  ;;  %p695_p9 = scmp.lt.s32.totalorder %s693_s19, %s687_s20 }
  0x67   : > { %p696_p3 = por %p695_p9, %p694_p0 }
  0x69   : > { %p697_p7 = pnand %p696_p3, %p690_p1 }
 0x135   : > { %v285_v4 = vpop.f32.mrb[0].mxu0 }
 0x136   : > { %v542_v5 = vpop.f32.mrb[1].mxu0  ;;  %v309_v7 = vmul.f32 %v285_v4, %v285_v4 }
 0x137   : > { %v288_v6 = vpop.f32.mrb[2].mxu0 }
 0x138   : > { %v299_v8 = vadd.f32 %v288_v6, %v285_v4  ;;  %v310_v9 = vmul.f32 %v288_v6, %v288_v6  ;;  %v534_v10 = vpack.c.bf16 %v288_v6, %v285_v4  ;;  %v543_v11 = vpop.f32.mrb[3].mxu0 }
 0x13a   : > { %v300_v12 = vrot.slane %v299_v8, 4  ;;  %v311_v13 = vadd.f32 %v310_v9, %v309_v7  ;;  %535 = vst [vmem:[%s222_s23] sm:$0xff] %v534_v10  }
 0x13b   : > { %700 = shalt.err (!%p697_p7)
}
 0x13c   : > { %s701_s27 = scalar_lea.hbm %s1009_s22, 128  ;;  %s705_s10 = scalar_lea.hbm %s1091_s2, 256 }
 0x13d   : > { %p702_p13 = scmp.ne.s32.totalorder %s1009_s22, %s701_s27  ;;  %p706_p12 = scmp.lt.u32.totalorder %s1009_s22, %s1091_s2 }
 0x13e   : > { %p707_p4 = scmp.lt.u32.totalorder %s705_s10, %s701_s27  ;;  %p709_p8 = scmp.lt.u32.totalorder %s701_s27, %s1009_s22 }
 0x13f   : > { %p703_p2 = pnand %p702_p13, %p1113_p10 }
 0x140   : > { %p708_p5 = por %p707_p4, %p706_p12 }
 0x141   : > { %p704_p6 = pneg %p703_p2 }
 0x142   : > { %p710_p11 = por %p709_p8, %p708_p5 }
 0x144   : > { %p711_p1 = pnand %p710_p11, %p704_p6 }
 0x146   : > { %714 = shalt.err (!%p711_p1)
}
 0x147   : > { %s814_s29 = smov 64   ;;  %s815_s21 = smov 4   ;;  %v301_v14 = vadd.f32 %v300_v12, %v299_v8  ;;  %v312_v15 = vrot.slane %v311_v13, 4  ;;  %v298_v22 = vld [vmem:[#allocation2] sm:$0x1]  ;;  %vm331_vm3 = vcmask 1040384  }
 0x148   : > { %550 = dma.vmem_to_hbm [thread:$0]  (%p1113_p10), %s1004_s26, 128, %s1009_s22, %s345_s5, %s814_s29, %s814_s29, %s815_s21   ;;  %v308_v25 = vld [vmem:[#allocation3] sm:$0x1] }
 0x149   : > { %v302_v16 = vrot.slane %v301_v14, 2  ;;  %v313_v17 = vadd.f32 %v312_v15, %v311_v13  ;;  %s514_s26 = sshll.u32 %s991_s9, 1  ;;  %s524_s18 = sshll.u32 %s797_s15, 5 }
 0x14a   : > { %s229_s22 = scalar_lea.vmem [#allocation10], %s514_s26  ;;  %s1040_s11 = scalar_lea.hbm %s1092_s3, %s524_s18 }
 0x14b   : > { %v303_v18 = vadd.f32 %v302_v16, %v301_v14  ;;  %v314_v19 = vrot.slane %v313_v17, 2  ;;  %s380_s5 = sshll.u32 %s229_s22, 4  ;;  %s350_s19 = scalar_lea.sflag [#allocation11], %s991_s9  ;;  %s1042_s5 = int_to_ptr.vmem [resolvable:$true] %s380_s5 }
 0x14c   : > { %s715_s27 = scalar_lea.vmem %s1042_s5, 32  ;;  %s816_s15 = smov [#allocation10]  }
 0x14d   : > { %v304_v20 = vrot.slane %v303_v18, 1  ;;  %v315_v21 = vadd.f32 %v314_v19, %v313_v17  ;;  %p716_p0 = scmp.ne.s32.totalorder %s1042_s5, %s715_s27  ;;  %s719_s7 = sshll.u32 %s816_s15, 4  ;;  %s720_s7 = int_to_ptr.vmem [resolvable:$false] %s719_s7 }
 0x14e   : > { %s721_s8 = scalar_lea.vmem %s720_s7, 64  ;;  %p722_p7 = scmp.lt.s32.totalorder %s1042_s5, %s720_s7 }
 0x14f   : > { %v305_v23 = vadd.f32 %v304_v20, %v303_v18  ;;  %v316_v24 = vrot.slane %v315_v21, 1  ;;  %p717_p9 = pnand %p716_p0, %p1113_p10  ;;  %p723_p13 = scmp.lt.s32.totalorder %s721_s8, %s715_s27 }
 0x151   : > { %v306_v26 = vadd.f32 %v305_v23, %v298_v22  ;;  %v317_v27 = vadd.f32 %v316_v24, %v315_v21  ;;  %p718_p3 = pneg %p717_p9  ;;  %p724_p2 = por %p723_p13, %p722_p7 }
 0x153   : > { %307 = vst [vmem:[#allocation2] sm:$0x1] %v306_v26  ;;  %v318_v28 = vadd.f32 %v317_v27, %v308_v25  ;;  %p725_p6 = pnand %p724_p2, %p718_p3 }
 0x155   : > { %319 = vst [vmem:[#allocation3] sm:$0x1] %v318_v28 }
 0x15a   : > { %v323_v29 = vld [vmem:[#allocation2] sm:$0x1] }
 0x15c   : > { %v517_v30 = vld [vmem:[#allocation3] ss:$0 sm:$0xff] }
 0x15d   : > { %v332_v31 = vsel %vm331_vm3, %v323_v29, %v517_v30 }
 0x15e   : > { %333 = vst [vmem:[%s229_s22] sm:$0x3] %v332_v31 }
 0x15f   : > { %728 = shalt.err (!%p725_p6)
}
 0x160   : > { %s729_s9 = scalar_lea.hbm %s1040_s11, 32  ;;  %s733_s23 = scalar_lea.hbm %s1092_s3, 64 }
 0x161   : > { %p730_p12 = scmp.ne.s32.totalorder %s1040_s11, %s729_s9  ;;  %p734_p8 = scmp.lt.u32.totalorder %s1040_s11, %s1092_s3 }
 0x162   : > { %p735_p11 = scmp.lt.u32.totalorder %s733_s23, %s729_s9  ;;  %p737_p0 = scmp.lt.u32.totalorder %s729_s9, %s1040_s11 }
 0x163   : > { %p731_p4 = pnand %p730_p12, %p1113_p10 }
 0x164   : > { %p736_p1 = por %p735_p11, %p734_p8 }
 0x165   : > { %p732_p5 = pneg %p731_p4 }
 0x166   : > { %p738_p9 = por %p737_p0, %p736_p1 }
 0x168   : > { %p739_p3 = pnand %p738_p9, %p732_p5 }
 0x16a   : > { %742 = shalt.err (!%p739_p3)
}
 0x16b   : > { %551 = dma.vmem_to_hbm [thread:$0]  (%p1113_p10), %s1042_s5, 32, %s1040_s11, %s350_s19  }
 0x16c PF: > { %s392_s26 = sand.u32 1, %s785_s12   ;;  %p1114_p7 = scmp.ne.s32.totalorder %s1103_s25, 0 }
 0x16d   : > { %p1115_p13 = scmp.ge.s32.totalorder %s805_s17, 2  ;;  %s393_s18 = scalar_lea.sflag [#allocation6], %s392_s26 }
 0x16f   : > { %p563_p2 = pnand %p1115_p13, %p1114_p7 }
 0x171   : > { %776 = dma.done.wait (!%p563_p2), %s393_s18, 128  }
 0x172   : > { %778 = vsyncadd (!%p563_p2), %s393_s18, 4294967168  ;;  %s402_s22 = scalar_lea.sflag [#allocation11], %s392_s26 }
 0x173   : > { %780 = dma.done.wait (!%p563_p2), %s402_s22, 32  }
 0x174   : > { %782 = vsyncadd (!%p563_p2), %s402_s22, 4294967264  ;;  %s24_s17 = sadd.s32 1, %s805_s17   ;;  %s1116_s12 = smov %s789_s13 }
 0x175   : > { %p21_p6 = scmp.ge.s32.totalorder %s24_s17, 4   ;;  %s1117_s13 = smov %s793_s14 }
 0x176   : > { %s1118_s14 = smov %s956_s28  ;;  %s1119_s15 = smov %s801_s16 }
 0x177   : > { %s1120_s16 = smov %s1122_s4  ;;  %23 = sbr.rel (!%p21_p6) target bundleno = 9 (0x9), region = 102 }
 0x17e   :  { %407 = vsyncpa [#allocation5], 1 }
 0x17f   :  { %409 = vsyncpa [#allocation5 + $0x1], 1 }
 0x180   :  { %410 = vsyncpa [#allocation8], 1 }
 0x181   :  { %411 = vsyncpa [#allocation6], 1 }
 0x182   :  { %413 = vsyncpa [#allocation6 + $0x1], 1 }
 0x183   :  { %414 = vsyncpa [#allocation11], 1 }
 0x184   :  { %416 = vsyncpa [#allocation11 + $0x1], 1 }

</bundles_post_ra>
